<compile_context>
chip_gen: v5e
topology: v5e:2x2
jax: 0.10.0
libtpu: 0.0.40
codegen_flags: <defaults>
</compile_context>

<pallas_src>
import functools

import jax
import jax.numpy as jnp
from jax import lax
from jax.experimental import pallas as pl
from jax.experimental.pallas import tpu as pltpu

MAT_DIFF_LOSS_SCALE = 0.001


def _device_kind():
    try:
        return jax.devices()[0].device_kind.lower()
    except Exception:
        return "unknown"


def _pointnet_loss_kernel(pred_ref, target_ref, trans_ref,
                          ce_out_ref, reg_out_ref,
                          ce_acc, reg_acc,
                          *, batch, blocks_per_core):
    c = pl.program_id(0)          # core-parallel axis (size 1 on 1-TC parts)
    b = pl.program_id(1)          # batch-reduction axis ("arbitrary")
    nb = pl.num_programs(1)

    @pl.when(b == 0)
    def _init():
        ce_acc[...] = jnp.zeros_like(ce_acc)
        reg_acc[...] = jnp.zeros_like(reg_acc)

    pred = pred_ref[...].astype(jnp.float32)     # (bb, C) small -> cheap cast
    tgt = target_ref[...]                        # (bb, 1) int32
    trans = trans_ref[...]                       # (bb, d, d) NATIVE dtype (bf16 ok)

    bb, C = pred.shape
    d = trans.shape[1]

    # Valid-row mask (partial last block / duplicated clamped blocks).
    # NOTE: keep this a where-select, not multiply-by-mask, so garbage rows
    # that produce inf/NaN are discarded rather than propagated.
    logical_blk = c * blocks_per_core + b
    row_ids = logical_blk * bb + lax.broadcasted_iota(jnp.int32, (bb, 1), 0)
    valid = row_ids < batch                      # (bb, 1) bool

    # ---------- cross entropy rows: logsumexp(pred_i) - pred_i[t_i] ---------
    row_max = jnp.max(pred, axis=-1, keepdims=True)
    shifted = pred - row_max
    lse = jnp.log(jnp.sum(jnp.exp(shifted), axis=-1, keepdims=True)) + row_max
    cls_iota = lax.broadcasted_iota(jnp.int32, (bb, C), 1)
    picked = jnp.sum(jnp.where(cls_iota == tgt, pred, 0.0),
                     axis=-1, keepdims=True)                     # (bb, 1)
    ce_rows = jnp.where(valid, lse - picked, 0.0)                # (bb, 1)
    ce_acc[...] += ce_rows          # defer cross-sublane reduce to finalize

    # ---------- feature-transform regularizer rows ---------------------------
    # gram = T T^T, accumulated in f32 on the MXU from native-dtype operands.
    gram = jnp.einsum('bij,bkj->bik', trans, trans,
                      preferred_element_type=jnp.float32)        # (bb, d, d) f32
    eye = (lax.broadcasted_iota(jnp.int32, (d, d), 0)
           == lax.broadcasted_iota(jnp.int32, (d, d), 1)).astype(jnp.float32)
    # ||G - I||_F per row; square fused into the lane reduce (single gram buf).
    gsq = jnp.sum(jnp.square(gram - eye), axis=-1)               # (bb, d)
    fro = jnp.sqrt(jnp.sum(gsq, axis=-1, keepdims=True))         # (bb, 1)
    reg_acc[...] += jnp.where(valid, fro, 0.0)

    @pl.when(b == nb - 1)
    def _finalize():
        ce_out_ref[0] = jnp.sum(ce_acc[...], axis=0, keepdims=True)
        reg_out_ref[0] = jnp.sum(reg_acc[...], axis=0, keepdims=True)


def pointnet_loss(pred, target, trans_feat, *,
                  mat_diff_loss_scale=MAT_DIFF_LOSS_SCALE,
                  block_b=None, num_cores=None,
                  vmem_limit_bytes=None, cast_trans_to_bf16=None):
    """pred: (B, C), target: (B,), trans_feat: (B, d, d) -> scalar f32 loss."""
    B, C = pred.shape
    d = trans_feat.shape[1]
    target2d = target.astype(jnp.int32).reshape(B, 1)

    kind = _device_kind()
    is_v7 = "v7" in kind
    is_v5e = ("v5" in kind) and (("lite" in kind) or ("v5e" in kind))
    is_big_vmem = ("v6" in kind) or ("v5" in kind)   # 128 MiB VMEM parts

    # ---- per-generation defaults -------------------------------------------
    if num_cores is None:
        num_cores = 2 if is_v7 else 1          # single TC on v5e/v6e
    if cast_trans_to_bf16 is None:
        cast_trans_to_bf16 = is_v5e            # v5e is HBM-BW bound on trans
    if cast_trans_to_bf16 and trans_feat.dtype == jnp.float32:
        trans_feat = trans_feat.astype(jnp.bfloat16)

    if vmem_limit_bytes is None:
        if is_v7:
            vmem_limit_bytes = 44 * 1024 * 1024   # of 64 MiB physical
            tile_budget = 24 * 1024 * 1024
        elif is_big_vmem:
            vmem_limit_bytes = 80 * 1024 * 1024   # of 128 MiB physical
            tile_budget = 48 * 1024 * 1024
        else:
            vmem_limit_bytes = 32 * 1024 * 1024
            tile_budget = 16 * 1024 * 1024
    else:
        tile_budget = max(4 * 1024 * 1024, vmem_limit_bytes // 2)

    t_isz = jnp.dtype(trans_feat.dtype).itemsize
    p_isz = jnp.dtype(pred.dtype).itemsize

    # ---- batch tile from total in-kernel footprint --------------------------
    # per-row bytes: double-buffered trans tile + f32 gram + pred (dbl-buf +
    # f32 cast) + target/accumulator slack.
    if block_b is None:
        per_row = d * d * (2 * t_isz + 4) + C * (2 * p_isz + 4) + 32
        block_b = tile_budget // max(1, per_row)
        block_b = max(8, min(2048, block_b))
    if block_b >= B:
        block_b = B                               # single full-batch tile
    else:
        block_b = max(8, (block_b // 8) * 8)      # (8,128) sublane rule
        if block_b >= B:
            block_b = B

    n_blocks = -(-B // block_b)
    num_cores = max(1, min(num_cores, n_blocks))
    bpc = -(-n_blocks // num_cores)               # batch blocks per core

    def in2(c, b):
        blk = jnp.minimum(c * bpc + b, n_blocks - 1)   # clamp: never OOB DMA
        return (blk, 0)

    def in3(c, b):
        blk = jnp.minimum(c * bpc + b, n_blocks - 1)
        return (blk, 0, 0)

    out3 = lambda c, b: (c, 0, 0)

    kernel = functools.partial(_pointnet_loss_kernel,
                               batch=B, blocks_per_core=bpc)

    cost = pl.CostEstimate(
        flops=2 * B * d * d * d + 4 * B * d * d + 8 * B * C,
        transcendentals=B * C + 2 * B,
        bytes_accessed=B * (d * d * t_isz + C * p_isz + 4) + 8 * num_cores,
    )

    ce_parts, reg_parts = pl.pallas_call(
        kernel,
        out_shape=(jax.ShapeDtypeStruct((num_cores, 1, 1), jnp.float32),
                   jax.ShapeDtypeStruct((num_cores, 1, 1), jnp.float32)),
        grid_spec=pltpu.PrefetchScalarGridSpec(
            num_scalar_prefetch=0,
            grid=(num_cores, bpc),
            in_specs=[
                pl.BlockSpec((block_b, C), in2),
                pl.BlockSpec((block_b, 1), in2),
                pl.BlockSpec((block_b, d, d), in3),
            ],
            out_specs=[
                pl.BlockSpec((1, 1, 1), out3),
                pl.BlockSpec((1, 1, 1), out3),
            ],
            scratch_shapes=[pltpu.VMEM((block_b, 1), jnp.float32),
                            pltpu.VMEM((block_b, 1), jnp.float32)],
        ),
        compiler_params=pltpu.CompilerParams(
            dimension_semantics=("parallel", "arbitrary"),
            vmem_limit_bytes=vmem_limit_bytes),
        cost_estimate=cost,
    )(pred, target2d, trans_feat)

    inv_b = jnp.float32(1.0 / B)                  # multiply, don't divide
    ce = jnp.sum(ce_parts) * inv_b
    reg = jnp.sum(reg_parts) * inv_b
    return ce + reg * jnp.float32(mat_diff_loss_scale)


def _reference_loss(pred, target, trans_feat):
    p = pred.astype(jnp.float32)
    t = trans_feat.astype(jnp.float32)
    logp = jax.nn.log_softmax(p, axis=-1)
    ce = -jnp.mean(logp[jnp.arange(p.shape[0]), target])
    d = t.shape[1]
    eye = jnp.eye(d, dtype=jnp.float32)
    gram = jnp.einsum('bij,bkj->bik', t, t)
    diff = gram - eye[None]
    reg = jnp.mean(jnp.sqrt(jnp.sum(diff * diff, axis=(1, 2))))
    return ce + reg * MAT_DIFF_LOSS_SCALE


if __name__ == "__main__":
    key = jax.random.PRNGKey(0)
    k1, k2, k3 = jax.random.split(key, 3)

    B, C, d = 20, 16, 16
    pred = jax.random.normal(k1, (B, C), dtype=jnp.float32)
    target = jax.random.randint(k2, (B,), 0, C, dtype=jnp.int32)
    trans_feat = jax.random.normal(k3, (B, d, d), dtype=jnp.float32) * 0.1

    ref = _reference_loss(pred, target, trans_feat)

    # Gridded path: 3 batch blocks of 8 rows (last block partial/masked),
    # forced 2-wide leading axis (exercises clamped/duplicated block masking).
    out = pointnet_loss(pred, target, trans_feat, block_b=8, num_cores=2,
                        cast_trans_to_bf16=False)
    jax.block_until_ready(out)
    assert jnp.allclose(out, ref, rtol=1e-4, atol=1e-4), (out, ref)

    # Auto-tuned path (per-generation defaults) with f32 trans forced:
    out2 = pointnet_loss(pred, target, trans_feat, cast_trans_to_bf16=False)
    jax.block_until_ready(out2)
    assert jnp.allclose(out2, ref, rtol=1e-4, atol=1e-4), (out2, ref)

    # bf16 trans path (native bf16 MXU feed), looser tolerance:
    out3 = pointnet_loss(pred, target, trans_feat.astype(jnp.bfloat16),
                         cast_trans_to_bf16=False)
    jax.block_until_ready(out3)
    assert jnp.allclose(out3, ref, rtol=2e-2, atol=2e-2), (out3, ref)

    print("KERNEL_OK")
</pallas_src>

<mosaic_0001>
module attributes {stable_mosaic.version = 11 : i64} {
  func.func @_pointnet_loss_kernel(%arg0: i32, %arg1: i32, %arg2: memref<8x16xf32, #tpu.memory_space<vmem>>, %arg3: memref<8x1xi32, #tpu.memory_space<vmem>>, %arg4: memref<8x16x16xf32, #tpu.memory_space<vmem>>, %arg5: memref<1x1x1xf32, #tpu.memory_space<vmem>>, %arg6: memref<1x1x1xf32, #tpu.memory_space<vmem>>, %arg7: memref<8x1xf32, #tpu.memory_space<vmem>>, %arg8: memref<8x1xf32, #tpu.memory_space<vmem>>) attributes {dimension_semantics = [#tpu.dimension_semantics<parallel>, #tpu.dimension_semantics<arbitrary>], iteration_bounds = array<i64: 2, 2>, scalar_prefetch = 0 : i64, scratch_operands = 2 : i64, tpu.core_type = #tpu.core_type<tc>, window_params = [{transform_indices = @transform_0, window_bounds = array<i64: 8, 16>}, {transform_indices = @transform_1, window_bounds = array<i64: 8, 1>}, {transform_indices = @transform_2, window_bounds = array<i64: 8, 16, 16>}, {transform_indices = @transform_3, window_bounds = array<i64: 1, 1, 1>}, {transform_indices = @transform_4, window_bounds = array<i64: 1, 1, 1>}]} {
    %c0_i32 = arith.constant 0 : i32
    %0 = arith.cmpi eq, %arg1, %c0_i32 : i32
    %1 = arith.extui %0 : i1 to i32
    %c0_i32_0 = arith.constant 0 : i32
    %2 = arith.cmpi ne, %1, %c0_i32_0 : i32
    scf.if %2 {
      %cst_24 = arith.constant 0.000000e+00 : f32
      %58 = vector.broadcast %cst_24 : f32 to vector<8x1xf32>
      %c0_25 = arith.constant 0 : index
      %c0_26 = arith.constant 0 : index
      %59 = vector.load %arg7[%c0_25, %c0_26] : memref<8x1xf32, #tpu.memory_space<vmem>>, vector<8x1xf32>
      tpu.vector_store %arg7[%c0_25, %c0_26], %58 {strides = array<i32>} : memref<8x1xf32, #tpu.memory_space<vmem>>, vector<8x1xf32>,
      %cst_27 = arith.constant 0.000000e+00 : f32
      %60 = vector.broadcast %cst_27 : f32 to vector<8x1xf32>
      %c0_28 = arith.constant 0 : index
      %c0_29 = arith.constant 0 : index
      %61 = vector.load %arg8[%c0_28, %c0_29] : memref<8x1xf32, #tpu.memory_space<vmem>>, vector<8x1xf32>
      tpu.vector_store %arg8[%c0_28, %c0_29], %60 {strides = array<i32>} : memref<8x1xf32, #tpu.memory_space<vmem>>, vector<8x1xf32>,
    } else {
    }
    %c0 = arith.constant 0 : index
    %c0_1 = arith.constant 0 : index
    %3 = vector.load %arg2[%c0, %c0_1] : memref<8x16xf32, #tpu.memory_space<vmem>>, vector<8x16xf32>
    %c0_2 = arith.constant 0 : index
    %c0_3 = arith.constant 0 : index
    %4 = vector.load %arg3[%c0_2, %c0_3] : memref<8x1xi32, #tpu.memory_space<vmem>>, vector<8x1xi32>
    %c0_4 = arith.constant 0 : index
    %c0_5 = arith.constant 0 : index
    %c0_6 = arith.constant 0 : index
    %5 = vector.load %arg4[%c0_4, %c0_5, %c0_6] : memref<8x16x16xf32, #tpu.memory_space<vmem>>, vector<8x16x16xf32>
    %c2_i32 = arith.constant 2 : i32
    %6 = arith.muli %arg0, %c2_i32 : i32
    %7 = arith.addi %6, %arg1 : i32
    %c8_i32 = arith.constant 8 : i32
    %8 = arith.muli %7, %c8_i32 : i32
    %9 = tpu.iota {dimensions = array<i32: 0>} : vector<8x1xi32>
    %10 = vector.broadcast %8 : i32 to vector<8x1xi32>
    %11 = arith.addi %10, %9 : vector<8x1xi32>
    %c20_i32 = arith.constant 20 : i32
    %12 = vector.broadcast %c20_i32 : i32 to vector<8x1xi32>
    %13 = arith.cmpi slt, %11, %12 : vector<8x1xi32>
    %cst = arith.constant dense<0xFF800000> : vector<8xf32>
    %14 = vector.multi_reduction <maximumf>, %3, %cst [1] : vector<8x16xf32> to vector<8xf32>
    %15 = vector.shape_cast %14 : vector<8xf32> to vector<8x1xf32>
    %16 = vector.broadcast %15 : vector<8x1xf32> to vector<8x16xf32>
    %17 = arith.subf %3, %16 : vector<8x16xf32>
    %18 = math.exp %17 : vector<8x16xf32>
    %cst_7 = arith.constant dense<0.000000e+00> : vector<8xf32>
    %19 = vector.multi_reduction <add>, %18, %cst_7 [1] : vector<8x16xf32> to vector<8xf32>
    %20 = vector.shape_cast %19 : vector<8xf32> to vector<8x1xf32>
    %21 = math.log %20 : vector<8x1xf32>
    %22 = arith.addf %21, %15 : vector<8x1xf32>
    %23 = tpu.iota {dimensions = array<i32: 1>} : vector<8x16xi32>
    %24 = vector.broadcast %4 : vector<8x1xi32> to vector<8x16xi32>
    %25 = arith.cmpi eq, %23, %24 : vector<8x16xi32>
    %cst_8 = arith.constant 0.000000e+00 : f32
    %26 = vector.broadcast %cst_8 : f32 to vector<8x16xf32>
    %27 = arith.select %25, %3, %26 : vector<8x16xi1>, vector<8x16xf32>
    %cst_9 = arith.constant dense<0.000000e+00> : vector<8xf32>
    %28 = vector.multi_reduction <add>, %27, %cst_9 [1] : vector<8x16xf32> to vector<8xf32>
    %29 = vector.shape_cast %28 : vector<8xf32> to vector<8x1xf32>
    %30 = arith.subf %22, %29 : vector<8x1xf32>
    %cst_10 = arith.constant 0.000000e+00 : f32
    %31 = vector.broadcast %cst_10 : f32 to vector<8x1xf32>
    %32 = arith.select %13, %30, %31 : vector<8x1xi1>, vector<8x1xf32>
    %c0_11 = arith.constant 0 : index
    %c0_12 = arith.constant 0 : index
    %33 = vector.load %arg7[%c0_11, %c0_12] : memref<8x1xf32, #tpu.memory_space<vmem>>, vector<8x1xf32>
    %34 = arith.addf %33, %32 : vector<8x1xf32>
    %c0_13 = arith.constant 0 : index
    %c0_14 = arith.constant 0 : index
    %35 = vector.load %arg7[%c0_13, %c0_14] : memref<8x1xf32, #tpu.memory_space<vmem>>, vector<8x1xf32>
    tpu.vector_store %arg7[%c0_13, %c0_14], %34 {strides = array<i32>} : memref<8x1xf32, #tpu.memory_space<vmem>>, vector<8x1xf32>,
    "tpu.trace_start"() <{level = 10 : i32, message = "bij,bkj->bik"}> : () -> ()
    %cst_15 = arith.constant dense<0.000000e+00> : vector<8x16x16xf32>
    %36 = tpu.matmul %5, %5, %cst_15 {dimension_numbers = #tpu.dot_dimension_numbers<[2], [2], [1], [1], [0, 0, 0, 1, 1, 1], [0], [0]>} : vector<8x16x16xf32>, vector<8x16x16xf32>, vector<8x16x16xf32> -> vector<8x16x16xf32>
    "tpu.trace_stop"() : () -> ()
    %37 = tpu.iota {dimensions = array<i32: 0>} : vector<16x16xi32>
    %38 = tpu.iota {dimensions = array<i32: 1>} : vector<16x16xi32>
    %39 = arith.cmpi eq, %37, %38 : vector<16x16xi32>
    %40 = arith.extui %39 : vector<16x16xi1> to vector<16x16xi32>
    %41 = arith.sitofp %40 : vector<16x16xi32> to vector<16x16xf32>
    %42 = vector.shape_cast %41 : vector<16x16xf32> to vector<1x16x16xf32>
    %43 = vector.broadcast %42 : vector<1x16x16xf32> to vector<8x16x16xf32>
    %44 = arith.subf %36, %43 : vector<8x16x16xf32>
    %45 = arith.mulf %44, %44 : vector<8x16x16xf32>
    %cst_16 = arith.constant dense<0.000000e+00> : vector<8x16xf32>
    %46 = vector.multi_reduction <add>, %45, %cst_16 [2] : vector<8x16x16xf32> to vector<8x16xf32>
    %cst_17 = arith.constant dense<0.000000e+00> : vector<8xf32>
    %47 = vector.multi_reduction <add>, %46, %cst_17 [1] : vector<8x16xf32> to vector<8xf32>
    %48 = vector.shape_cast %47 : vector<8xf32> to vector<8x1xf32>
    %49 = math.sqrt %48 : vector<8x1xf32>
    %c0_18 = arith.constant 0 : index
    %c0_19 = arith.constant 0 : index
    %50 = vector.load %arg8[%c0_18, %c0_19] : memref<8x1xf32, #tpu.memory_space<vmem>>, vector<8x1xf32>
    %cst_20 = arith.constant 0.000000e+00 : f32
    %51 = vector.broadcast %cst_20 : f32 to vector<8x1xf32>
    %52 = arith.select %13, %49, %51 : vector<8x1xi1>, vector<8x1xf32>
    %53 = arith.addf %50, %52 : vector<8x1xf32>
    %c0_21 = arith.constant 0 : index
    %c0_22 = arith.constant 0 : index
    %54 = vector.load %arg8[%c0_21, %c0_22] : memref<8x1xf32, #tpu.memory_space<vmem>>, vector<8x1xf32>
    tpu.vector_store %arg8[%c0_21, %c0_22], %53 {strides = array<i32>} : memref<8x1xf32, #tpu.memory_space<vmem>>, vector<8x1xf32>,
    %c1_i32 = arith.constant 1 : i32
    %55 = arith.cmpi eq, %arg1, %c1_i32 : i32
    %56 = arith.extui %55 : i1 to i32
    %c0_i32_23 = arith.constant 0 : i32
    %57 = arith.cmpi ne, %56, %c0_i32_23 : i32
    scf.if %57 {
      %c0_24 = arith.constant 0 : index
      %c0_25 = arith.constant 0 : index
      %58 = vector.load %arg7[%c0_24, %c0_25] : memref<8x1xf32, #tpu.memory_space<vmem>>, vector<8x1xf32>
      %cst_26 = arith.constant dense<0.000000e+00> : vector<1xf32>
      %59 = vector.multi_reduction <add>, %58, %cst_26 [0] : vector<8x1xf32> to vector<1xf32>
      %60 = vector.shape_cast %59 : vector<1xf32> to vector<1x1xf32>
      %c0_27 = arith.constant 0 : index
      %c0_28 = arith.constant 0 : index
      %c0_29 = arith.constant 0 : index
      %61 = vector.load %arg5[%c0_27, %c0_28, %c0_29] : memref<1x1x1xf32, #tpu.memory_space<vmem>>, vector<1x1x1xf32>
      %62 = vector.shape_cast %61 : vector<1x1x1xf32> to vector<1x1xf32>
      %63 = vector.shape_cast %60 : vector<1x1xf32> to vector<1x1x1xf32>
      tpu.vector_store %arg5[%c0_27, %c0_28, %c0_29], %63 {strides = array<i32>} : memref<1x1x1xf32, #tpu.memory_space<vmem>>, vector<1x1x1xf32>,
      %c0_30 = arith.constant 0 : index
      %c0_31 = arith.constant 0 : index
      %64 = vector.load %arg8[%c0_30, %c0_31] : memref<8x1xf32, #tpu.memory_space<vmem>>, vector<8x1xf32>
      %cst_32 = arith.constant dense<0.000000e+00> : vector<1xf32>
      %65 = vector.multi_reduction <add>, %64, %cst_32 [0] : vector<8x1xf32> to vector<1xf32>
      %66 = vector.shape_cast %65 : vector<1xf32> to vector<1x1xf32>
      %c0_33 = arith.constant 0 : index
      %c0_34 = arith.constant 0 : index
      %c0_35 = arith.constant 0 : index
      %67 = vector.load %arg6[%c0_33, %c0_34, %c0_35] : memref<1x1x1xf32, #tpu.memory_space<vmem>>, vector<1x1x1xf32>
      %68 = vector.shape_cast %67 : vector<1x1x1xf32> to vector<1x1xf32>
      %69 = vector.shape_cast %66 : vector<1x1xf32> to vector<1x1x1xf32>
      tpu.vector_store %arg6[%c0_33, %c0_34, %c0_35], %69 {strides = array<i32>} : memref<1x1x1xf32, #tpu.memory_space<vmem>>, vector<1x1x1xf32>,
    } else {
    }
    return
  }
  func.func @transform_0(%arg0: i32, %arg1: i32) -> (i32, i32) {
    %c2_i32 = arith.constant 2 : i32
    %0 = arith.muli %arg0, %c2_i32 : i32
    %1 = arith.addi %0, %arg1 : i32
    %c2_i32_0 = arith.constant 2 : i32
    %2 = arith.minsi %1, %c2_i32_0 : i32
    %c0_i32 = arith.constant 0 : i32
    %c0_i32_1 = arith.constant 0 : i32
    return %2, %c0_i32 : i32, i32
  }
  func.func @transform_1(%arg0: i32, %arg1: i32) -> (i32, i32) {
    %c2_i32 = arith.constant 2 : i32
    %0 = arith.muli %arg0, %c2_i32 : i32
    %1 = arith.addi %0, %arg1 : i32
    %c2_i32_0 = arith.constant 2 : i32
    %2 = arith.minsi %1, %c2_i32_0 : i32
    %c0_i32 = arith.constant 0 : i32
    %c0_i32_1 = arith.constant 0 : i32
    return %2, %c0_i32 : i32, i32
  }
  func.func @transform_2(%arg0: i32, %arg1: i32) -> (i32, i32, i32) {
    %c2_i32 = arith.constant 2 : i32
    %0 = arith.muli %arg0, %c2_i32 : i32
    %1 = arith.addi %0, %arg1 : i32
    %c2_i32_0 = arith.constant 2 : i32
    %2 = arith.minsi %1, %c2_i32_0 : i32
    %c0_i32 = arith.constant 0 : i32
    %c0_i32_1 = arith.constant 0 : i32
    %c0_i32_2 = arith.constant 0 : i32
    return %2, %c0_i32, %c0_i32_1 : i32, i32, i32
  }
  func.func @transform_3(%arg0: i32, %arg1: i32) -> (i32, i32, i32) {
    %c0_i32 = arith.constant 0 : i32
    %c0_i32_0 = arith.constant 0 : i32
    %c0_i32_1 = arith.constant 0 : i32
    return %arg0, %c0_i32, %c0_i32_0 : i32, i32, i32
  }
  func.func @transform_4(%arg0: i32, %arg1: i32) -> (i32, i32, i32) {
    %c0_i32 = arith.constant 0 : i32
    %c0_i32_0 = arith.constant 0 : i32
    %c0_i32_1 = arith.constant 0 : i32
    return %arg0, %c0_i32, %c0_i32_0 : i32, i32, i32
  }
}

</mosaic_0001>

<bundles_post_ra>
// kernel: tpu_custom_call.1
= control target key start
LH: loop header
LB: loop body
LE: loop exit
PB: predicated region body
PF: predicated region fallthrough
CT: control target
= control target key end

     0   :  { %s1135_s15 = smov 0   ;;  %s1137_s16 = smov 0   ;;  %s1343_s0 = inlined_call_operand.vmem [shape: f32[20,16], index: 0, kind: input, shape index: {}]   ;;  %s1344_s1 = inlined_call_operand.vmem [shape: s32[20,1], index: 1, kind: input, shape index: {}]   ;;  %s1345_s2 = inlined_call_operand.vmem [shape: f32[20,16,16], index: 2, kind: input, shape index: {}]   ;;  %s1346_s3 = inlined_call_operand.vmem [shape: f32[2,1,1], index: 3, kind: output, shape index: {0}]   ;;  %s1347_s4 = inlined_call_operand.vmem [shape: f32[2,1,1], index: 4, kind: output, shape index: {1}]  }
   0x1   :  { %s1139_s17 = smov 0   ;;  %s1141_s18 = smov 0  }
   0x2   :  { %s1143_s19 = smov 0  }
   0x3 LB: > { %s24_s20 = sadd.s32 1, %s1097_s17  ;;  %s27_s21 = sadd.s32 1, %s1101_s18  ;;  %s1105_s19 = sphi %s1143_s19, %s15_s19   ;;  %s1101_s18 = sphi %s1141_s18, %s1351_s18   ;;  %s1097_s17 = sphi %s1139_s17, %s1350_s17   ;;  %s1093_s16 = sphi %s1137_s16, %s1349_s16   ;;  %s1089_s15 = sphi %s1135_s15, %s1348_s15  }
   0x4   : > { %p25_p0 = scmp.ge.s32.totalorder %s24_s20, 2  ;;  %p960_p1 = scmp.ge.s32.totalorder %s1105_s19, 1 }
   0x5   : > { %p255_p2 = scmp.lt.s32.totalorder %s1105_s19, 5 }
   0x6   : > { %s1353_s20 = smov (%p25_p0, %s24_s20), 0  ;;  %s1355_s21 = smov (!%p25_p0, %s27_s21), %s1101_s18 }
   0x7   : > { %p256_p3 = pnand %p960_p1, %p255_p2  ;;  %p29_p4 = scmp.ge.s32.totalorder %s1355_s21, 2 }
   0x8   : > { %s961_s22 = sshll.u32 (!%p256_p3), %s1093_s16, 1  ;;  %p357_p5 = scmp.lt.s32.totalorder (!%p256_p3), %s1093_s16, 1 }
   0x9   : > { %s1357_s21 = smov (%p29_p4, %s1355_s21), 0  ;;  %259 = sbr.rel (%p256_p3) target bundleno = 492 (0x1ec), region = 32 }
   0xa   : > { %s1168_s23 = sadd.s32 (!%p256_p3), %s1089_s15, %s961_s22  ;;  %p975_p8 = scmp.ne.s32.totalorder (!%p256_p3), %s1089_s15, 0 }
   0xb   : > { %p310_p6 = scmp.lt.s32.totalorder (!%p256_p3), %s1168_s23, 2 }
   0xe   : > { %s1359_s16 = smov (!%p357_p5, %s1093_s16), 1 }
   0xf   : > { %s311_s24 = scalar_select %p310_p6, %s1168_s23, 2 }
  0x10   : > { %s359_s27 = scalar_lea.vmem %s1346_s3, %s1359_s16  ;;  %s362_s30 = scalar_lea.vmem %s1347_s4, %s1359_s16 }
  0x11   : > { %s313_s5 = scalar_select %p310_p6, %s311_s24, 2 }
  0x12   : > { %s972_s6 = sshll.u32 %s311_s24, 3 }
  0x13   : > { %s965_s7 = sshll.u32 %s313_s5, 3  ;;  %p342_p7 = scmp.lt.s32.totalorder %s972_s6, 19 }
  0x14   : > { %s1185_s10 = scalar_lea.vmem %s1343_s0, %s965_s7  ;;  %s1190_s13 = scalar_lea.vmem %s1344_s1, %s965_s7 }
  0x15   : > { %s1361_s6 = smov (!%p342_p7, %s972_s6), 19  ;;  %366 = sbr.rel (%p975_p8) target bundleno = 29 (0x1d), region = 36 }
  0x16   : > { %s1015_s14 = sshll.u32 %s1361_s6, 4 }
  0x17   : > { %s1195_s26 = scalar_lea.vmem %s1345_s2, %s1015_s14 }
  0x1a   : > { %vm367_vm0 = vcmask 7168   ;;  %v1107_v0 = vmov 0.0  }
  0x1b   : > { %368 = vst.msk [vmem:[#allocation2] sm:$0xff] %vm367_vm0, %v1107_v0 }
  0x1c   : > { %369 = vst.msk [vmem:[#allocation3] sm:$0xff] %vm367_vm0, %v1107_v0 }
  0x1d PF: > { %v373_v1 = vld [vmem:[%s1195_s26 + $0x8] sm:$0xff]  ;;  %vm396_vm1 = vcmask 130048   ;;  %v375_v2 = vld [vmem:[%s1195_s26 + $0x18] sm:$0xff]  ;;  %v372_v5 = vld [vmem:[%s1195_s26] sm:$0xff]  ;;  %v391_v17 = vlaneseq  ;;  %v1108_v20 = vmov 0.0   ;;  %v1109_v48 = vmov 0  }
  0x1e   : > { %v377_v3 = vld [vmem:[%s1195_s26 + $0x28] sm:$0xff]  ;;  %978 = vmatpush.xpose.msk.msra.mxu0 %vm396_vm1, %v373_v1  ;;  %982 = vmatpush.xpose.msk.msra.mxu1 %vm396_vm1, %v375_v2  ;;  %v379_v4 = vld [vmem:[%s1195_s26 + $0x38] sm:$0xff]  ;;  %v374_v6 = vld [vmem:[%s1195_s26 + $0x10] sm:$0xff]  ;;  %vm763_vm4 = vcmask 130112   ;;  %vm786_vm5 = vcmask 1041409   ;;  %vm788_vm6 = vcmask 1042434  }
  0x1f   : > { %986 = vmatpush.xpose.msk.msra.mxu2 %vm396_vm1, %v377_v3  ;;  %990 = vmatpush.xpose.msk.msra.mxu3 %vm396_vm1, %v379_v4  ;;  %v376_v7 = vld [vmem:[%s1195_s26 + $0x20] sm:$0xff]  ;;  %v378_v8 = vld [vmem:[%s1195_s26 + $0x30] sm:$0xff]  ;;  %v385_v9 = vld [vmem:[%s1195_s26 + $0x68] sm:$0xff]  ;;  %v1246_v18 = vshrl.u32 %v391_v17, 7  ;;  %v1248_v19 = vand.u32 127, %v391_v17  ;;  %vm790_vm7 = vcmask 1043459  }
  0x20   : > { %v381_v10 = vld [vmem:[%s1195_s26 + $0x48] sm:$0xff]  ;;  %v387_v11 = vld [vmem:[%s1195_s26 + $0x78] sm:$0xff]  ;;  %v384_v13 = vld [vmem:[%s1195_s26 + $0x60] sm:$0xff]  ;;  %1059 = vset.pattern.permute.xlu2 %v1109_v48  ;;  %1060 = vset.pattern.permute.xlu0 %v1109_v48  ;;  %vm792_vm8 = vcmask 1044484   ;;  %vm794_vm9 = vcmask 1045509   ;;  %vm796_vm10 = vcmask 1046534  }
  0x21   : > { %v383_v12 = vld [vmem:[%s1195_s26 + $0x58] sm:$0xff]  ;;  %v380_v14 = vld [vmem:[%s1195_s26 + $0x40] sm:$0xff]  ;;  %v386_v15 = vld [vmem:[%s1195_s26 + $0x70] sm:$0xff]  ;;  %vm658_vm2 = vcmp.eq.s32.totalorder %v1246_v18, %v1248_v19  ;;  %v657_v22 = vadd.s32 8, %v1246_v18  ;;  %vm798_vm11 = vcmask 1047559   ;;  %s977_s24 = sshll.u32 %s1168_s23, 3 }
  0x22   : > { %979 = vmatpush.xpose.msk.msra.mxu0 %vm396_vm1, %v372_v5  ;;  %983 = vmatpush.xpose.msk.msra.mxu1 %vm396_vm1, %v374_v6  ;;  %v382_v16 = vld [vmem:[%s1195_s26 + $0x50] sm:$0xff]  ;;  %v1010_v21 = vsel %vm658_vm2, 1.0, %v1108_v20  ;;  %vm423_vm15 = vcmask 7168   ;;  %p1012_p9 = scmp.ne.s32.totalorder %s1089_s15, 1 }
  0x23   : > { %987 = vmatpush.xpose.msk.msra.mxu2 %vm396_vm1, %v376_v7  ;;  %991 = vmatpush.xpose.msk.msra.mxu3 %vm396_vm1, %v378_v8  ;;  %vm659_vm3 = vcmp.eq.s32.totalorder %v657_v22, %v1248_v19 }
  0x24   : > { %v1256_v31 = vsel %vm659_vm3, 1.0, %v1108_v20 }
  0x25   : > { %980 = vmatmul.msk.f32.vlgmr.msra.gmra.mxu0 %vm396_vm1, %v372_v5  ;;  %984 = vmatmul.msk.f32.vlgmr.msra.gmra.mxu1 %vm396_vm1, %v374_v6 }
  0x26   : > { %994 = vmatpush.xpose.msk.msrb.mxu0 %vm396_vm1, %v381_v10  ;;  %988 = vmatmul.msk.f32.vlgmr.msra.gmra.mxu2 %vm396_vm1, %v376_v7 }
  0x27   : > { %1002 = vmatpush.xpose.msk.msrb.mxu2 %vm396_vm1, %v385_v9  ;;  %992 = vmatmul.msk.f32.vlgmr.msra.gmra.mxu3 %vm396_vm1, %v378_v8 }
  0x28   : > { %1006 = vmatpush.xpose.msk.msrb.mxu3 %vm396_vm1, %v387_v11  ;;  %998 = vmatpush.xpose.msk.msrb.mxu1 %vm396_vm1, %v383_v12 }
  0x2a   : > { %995 = vmatpush.xpose.msk.msrb.mxu0 %vm396_vm1, %v380_v14 }
  0x2b   : > { %1003 = vmatpush.xpose.msk.msrb.mxu2 %vm396_vm1, %v384_v13 }
  0x2c   : > { %1007 = vmatpush.xpose.msk.msrb.mxu3 %vm396_vm1, %v386_v15  ;;  %999 = vmatpush.xpose.msk.msrb.mxu1 %vm396_vm1, %v382_v16 }
  0x2d   : > { %985 = vmatmul.msk.f32.gmra.mxu1 %vm396_vm1, %v375_v2  ;;  %981 = vmatmul.msk.f32.gmra.mxu0 %vm396_vm1, %v373_v1 }
  0x2e   : > { %989 = vmatmul.msk.f32.gmra.mxu2 %vm396_vm1, %v377_v3 }
  0x2f   : > { %993 = vmatmul.msk.f32.gmra.mxu3 %vm396_vm1, %v379_v4 }
  0x35   : > { %996 = vmatmul.msk.f32.vlgmr.msrb.gmra.mxu0 %vm396_vm1, %v380_v14  ;;  %1000 = vmatmul.msk.f32.vlgmr.msrb.gmra.mxu1 %vm396_vm1, %v382_v16 }
  0x36   : > { %1004 = vmatmul.msk.f32.vlgmr.msrb.gmra.mxu2 %vm396_vm1, %v384_v13 }
  0x37   : > { %1008 = vmatmul.msk.f32.vlgmr.msrb.gmra.mxu3 %vm396_vm1, %v386_v15 }
  0x3d   : > { %997 = vmatmul.msk.f32.gmra.mxu0 %vm396_vm1, %v381_v10  ;;  %1001 = vmatmul.msk.f32.gmra.mxu1 %vm396_vm1, %v383_v12 }
  0x3e   : > { %1005 = vmatmul.msk.f32.gmra.mxu2 %vm396_vm1, %v385_v9 }
  0x3f   : > { %1009 = vmatmul.msk.f32.gmra.mxu3 %vm396_vm1, %v387_v11 }
  0xa2   : > { %v448_v23 = vpop.f32.mrf.mxu0  ;;  %v477_v24 = vpop.f32.mrf.mxu1 }
  0xa3   : > { %v664_v25 = vsub.f32 %v448_v23, %v1010_v21  ;;  %v666_v26 = vsub.f32 %v477_v24, %v1010_v21 }
  0xa5   : > { %v680_v27 = vmul.f32 %v664_v25, %v664_v25  ;;  %v682_v28 = vmul.f32 %v666_v26, %v666_v26  ;;  %v1279_v25 = vld [vmem:[%s1185_s10] sm:$0xff] }
  0xa7   : > { %v702_v29 = vsel %vm396_vm1, %v682_v28, 0.0  ;;  %v696_v30 = vsel %vm396_vm1, %v680_v27, 0.0  ;;  %v397_v28 = vsel %vm396_vm1, %v1279_v25, -inf }
  0xa8   : > { %703 = vadd.xlane.f32.xlu1 %v702_v29  ;;  %697 = vadd.xlane.f32.xlu0 %v696_v30  ;;  %v371_v29 = vld [vmem:[%s1190_s13] sm:$0xff] }
  0xa9   : > { %v506_v32 = vpop.f32.mrf.mxu2 }
  0xaa   : > { %v535_v33 = vpop.f32.mrf.mxu3  ;;  %v668_v34 = vsub.f32 %v506_v32, %v1010_v21  ;;  %v480_v35 = vpop.f32.mrf.mxu1 }
  0xab   : > { %v670_v36 = vsub.f32 %v535_v33, %v1010_v21  ;;  %v451_v37 = vpop.f32.mrf.mxu0  ;;  %v667_v38 = vsub.f32 %v480_v35, %v1256_v31 }
  0xac   : > { %v684_v39 = vmul.f32 %v668_v34, %v668_v34  ;;  %v665_v45 = vsub.f32 %v451_v37, %v1256_v31 }
  0xad   : > { %v686_v40 = vmul.f32 %v670_v36, %v670_v36  ;;  %v683_v41 = vmul.f32 %v667_v38, %v667_v38 }
  0xae   : > { %v708_v42 = vsel %vm396_vm1, %v684_v39, 0.0  ;;  %v681_v53 = vmul.f32 %v665_v45, %v665_v45 }
  0xaf   : > { %v714_v43 = vsel %vm396_vm1, %v686_v40, 0.0  ;;  %709 = vadd.xlane.f32.xlu2 %v708_v42  ;;  %v705_v44 = vsel %vm396_vm1, %v683_v41, 0.0  ;;  %v761_v41 = vadd.s32 4294967288, %v1248_v19 }
  0xb0   : > { %706 = vadd.xlane.f32.xlu1 %v705_v44  ;;  %715 = vadd.xlane.f32.xlu0 %v714_v43  ;;  %v699_v60 = vsel %vm396_vm1, %v681_v53, 0.0 }
  0xb1   : > { %v509_v46 = vpop.f32.mrf.mxu2 }
  0xb2   : > { %v538_v47 = vpop.f32.mrf.mxu3  ;;  %v669_v49 = vsub.f32 %v509_v46, %v1256_v31  ;;  %v593_v52 = vpop.f32.mrf.mxu1 }
  0xb3   : > { %v671_v50 = vsub.f32 %v538_v47, %v1256_v31  ;;  %v564_v51 = vpop.f32.mrf.mxu0  ;;  %v674_v57 = vsub.f32 %v593_v52, %v1010_v21 }
  0xb4   : > { %v685_v54 = vmul.f32 %v669_v49, %v669_v49  ;;  %v672_v56 = vsub.f32 %v564_v51, %v1010_v21 }
  0xb5   : > { %v687_v55 = vmul.f32 %v671_v50, %v671_v50  ;;  %v690_v62 = vmul.f32 %v674_v57, %v674_v57 }
  0xb6   : > { %v711_v58 = vsel %vm396_vm1, %v685_v54, 0.0  ;;  %v688_v61 = vmul.f32 %v672_v56, %v672_v56 }
  0xb7   : > { %v717_v59 = vsel %vm396_vm1, %v687_v55, 0.0  ;;  %712 = vadd.xlane.f32.xlu2 %v711_v58  ;;  %v726_v6 = vsel %vm396_vm1, %v690_v62, 0.0 }
  0xb8   : > { %718 = vadd.xlane.f32.xlu1 %v717_v59  ;;  %700 = vadd.xlane.f32.xlu0 %v699_v60  ;;  %v720_v4 = vsel %vm396_vm1, %v688_v61, 0.0 }
  0xb9   : > { %v622_v63 = vpop.f32.mrf.mxu2 }
  0xba   : > { %v651_v0 = vpop.f32.mrf.mxu3  ;;  %v676_v1 = vsub.f32 %v622_v63, %v1010_v21  ;;  %v596_v12 = vpop.f32.mrf.mxu1 }
  0xbb   : > { %v567_v2 = vpop.f32.mrf.mxu0  ;;  %v678_v5 = vsub.f32 %v651_v0, %v1010_v21  ;;  %v675_v17 = vsub.f32 %v596_v12, %v1256_v31 }
  0xbc   : > { %v692_v3 = vmul.f32 %v676_v1, %v676_v1  ;;  %v673_v7 = vsub.f32 %v567_v2, %v1256_v31 }
  0xbd   : > { %v694_v9 = vmul.f32 %v678_v5, %v678_v5  ;;  %v691_v23 = vmul.f32 %v675_v17, %v675_v17 }
  0xbe   : > { %v732_v8 = vsel %vm396_vm1, %v692_v3, 0.0  ;;  %v689_v10 = vmul.f32 %v673_v7, %v673_v7 }
  0xbf   : > { %721 = vadd.xlane.f32.xlu2 %v720_v4  ;;  %v738_v16 = vsel %vm396_vm1, %v694_v9, 0.0  ;;  %v729_v26 = vsel %vm396_vm1, %v691_v23, 0.0 }
  0xc0   : > { %727 = vadd.xlane.f32.xlu1 %v726_v6  ;;  %733 = vadd.xlane.f32.xlu0 %v732_v8  ;;  %v723_v20 = vsel %vm396_vm1, %v689_v10, 0.0 }
  0xc1   : > { %v625_v11 = vpop.f32.mrf.mxu2 }
  0xc2   : > { %v677_v13 = vsub.f32 %v625_v11, %v1256_v31  ;;  %v654_v14 = vpop.f32.mrf.mxu3 }
  0xc3   : > { %v679_v21 = vsub.f32 %v654_v14, %v1256_v31 }
  0xc4   : > { %v693_v15 = vmul.f32 %v677_v13, %v677_v13 }
  0xc5   : > { %v695_v24 = vmul.f32 %v679_v21, %v679_v21 }
  0xc6   : > { %v735_v22 = vsel %vm396_vm1, %v693_v15, 0.0 }
  0xc7   : > { %739 = vadd.xlane.f32.xlu2 %v738_v16  ;;  %v741_v27 = vsel %vm396_vm1, %v695_v24, 0.0 }
  0xc8   : > { %736 = vadd.xlane.f32.xlu1 %v735_v22  ;;  %724 = vadd.xlane.f32.xlu0 %v723_v20 }
  0xcf   : > { %730 = vadd.xlane.f32.xlu2 %v729_v26 }
  0xd0   : > { %742 = vadd.xlane.f32.xlu0 %v741_v27  ;;  %398 = vmax.xlane.f32.xlu1 %v397_v28 }
  0xe7   : > { %412 = vperm.xlu2 %1059, %v371_v29  }
 0x11b   : > { %v704_v30 = vpop.xlane.xlu1 %703  ;;  %v698_v31 = vpop.xlane.xlu0 %697 }
 0x11c   : > { %v760_v43 = vperm.slane %v698_v31, %v1248_v19  ;;  %v765_v45 = vperm.slane %v704_v30, %v1248_v19  ;;  %v393_v30 = vstv %s977_s24 }
 0x122   : > { %v710_v32 = vpop.xlane.xlu2 %709 }
 0x123   : > { %v707_v33 = vpop.xlane.xlu1 %706  ;;  %v716_v34 = vpop.xlane.xlu0 %715  ;;  %v768_v52 = vperm.slane %v710_v32, %v1248_v19 }
 0x124   : > { %v766_v44 = vperm.slane %v707_v33, %v761_v41  ;;  %v771_v57 = vperm.slane %v716_v34, %v1248_v19 }
 0x126   : > { %v767_v51 = vsel %vm763_vm4, %v766_v44, %v765_v45 }
 0x12a   : > { %v713_v35 = vpop.xlane.xlu2 %712 }
 0x12b   : > { %v719_v36 = vpop.xlane.xlu1 %718  ;;  %v701_v37 = vpop.xlane.xlu0 %700  ;;  %v769_v48 = vperm.slane %v713_v35, %v761_v41 }
 0x12c   : > { %v762_v42 = vperm.slane %v701_v37, %v761_v41  ;;  %v772_v54 = vperm.slane %v719_v36, %v761_v41 }
 0x12d   : > { %v770_v56 = vsel %vm763_vm4, %v769_v48, %v768_v52 }
 0x12e   : > { %v764_v46 = vsel %vm763_vm4, %v762_v42, %v760_v43  ;;  %v773_v60 = vsel %vm763_vm4, %v772_v54, %v771_v57  ;;  %v816_v43 = vld [vmem:[#allocation3] sm:$0xff] }
 0x12f   : > { %v787_v53 = vsel %vm786_vm5, %v767_v51, %v764_v46 }
 0x130   : > { %v789_v58 = vsel %vm788_vm6, %v770_v56, %v787_v53 }
 0x131   : > { %v791_v1 = vsel %vm790_vm7, %v773_v60, %v789_v58 }
 0x132   : > { %v722_v38 = vpop.xlane.xlu2 %721 }
 0x133   : > { %v728_v39 = vpop.xlane.xlu1 %727  ;;  %v734_v40 = vpop.xlane.xlu0 %733  ;;  %v774_v59 = vperm.slane %v722_v38, %v1248_v19  ;;  %v421_v38 = vld [vmem:[#allocation2] sm:$0xff] }
 0x134   : > { %v777_v0 = vperm.slane %v728_v39, %v1248_v19  ;;  %v780_v5 = vperm.slane %v734_v40, %v1248_v19 }
 0x13a   : > { %v740_v47 = vpop.xlane.xlu2 %739 }
 0x13b   : > { %v737_v49 = vpop.xlane.xlu1 %736  ;;  %v725_v50 = vpop.xlane.xlu0 %724  ;;  %v783_v6 = vperm.slane %v740_v47, %v1248_v19 }
 0x13c   : > { %v775_v55 = vperm.slane %v725_v50, %v761_v41  ;;  %v781_v61 = vperm.slane %v737_v49, %v761_v41 }
 0x13e   : > { %v776_v62 = vsel %vm763_vm4, %v775_v55, %v774_v59  ;;  %v782_v11 = vsel %vm763_vm4, %v781_v61, %v780_v5 }
 0x13f   : > { %v793_v9 = vsel %vm792_vm8, %v776_v62, %v791_v1 }
 0x142   : > { %v731_v63 = vpop.xlane.xlu2 %730 }
 0x143   : > { %v778_v2 = vperm.slane %v731_v63, %v761_v41  ;;  %v743_v3 = vpop.xlane.xlu0 %742  ;;  %v399_v4 = vpop.xlane.xlu1 %398 }
 0x144   : > { %v784_v7 = vperm.slane %v743_v3, %v761_v41  ;;  %v400_v8 = vsub.f32 %v1279_v25, %v399_v4 }
 0x145   : > { %v779_v10 = vsel %vm763_vm4, %v778_v2, %v777_v0 }
 0x146   : > { %v401_v12 = vmul.f32 1.442695, %v400_v8  ;;  %v785_v13 = vsel %vm763_vm4, %v784_v7, %v783_v6  ;;  %v795_v14 = vsel %vm794_vm9, %v779_v10, %v793_v9 }
 0x147   : > { %v797_v15 = vsel %vm796_vm10, %v782_v11, %v795_v14 }
 0x148   : > { %1061 = vpow2.f32 %v401_v12  ;;  %v799_v16 = vsel %vm798_vm11, %v785_v13, %v797_v15 }
 0x149   : > { %v801_v17 = vsel %vm396_vm1, %v799_v16, 0.0 }
 0x14a   : > { %802 = vadd.xlane.f32.xlu0 %v801_v17  ;;  %v413_v20 = vpop.permute.xlu2 %412 }
 0x14b   : > { %vm414_vm12 = vcmp.eq.s32.totalorder %v1248_v19, %v413_v20 }
 0x14c   : > { %v415_v21 = vsel %vm414_vm12, %v1279_v25, 0.0  ;;  %v394_v25 = vadd.s32 %v393_v30, %v1246_v18 }
 0x14d   : > { %v416_v24 = vsel %vm396_vm1, %v415_v21, 0.0 }
 0x14e   : > { %v1062_v22 = vpop.eup %1061  ;;  %vm395_vm13 = vcmp.lt.s32.totalorder %v394_v25, 20 }
 0x14f   : > { %v403_v23 = vsel %vm396_vm1, %v1062_v22, 0.0 }
 0x150   : > { %404 = vadd.xlane.f32.xlu1 %v403_v23 }
 0x152   : > { %417 = vadd.xlane.f32.xlu0 %v416_v24 }
 0x1bd   : > { %v803_v26 = vpop.xlane.xlu0 %802 }
 0x1be   : > { %1063 = vrsqrt.f32 %v803_v26  ;;  %vm811_vm14 = vcmp.eq.f32.partialorder %v803_v26, inf  ;;  %v814_v41 = vand.u32 2147483648, %v803_v26  ;;  %vm813_vm0 = vcmp.eq.f32.partialorder %v803_v26, 0.0 }
 0x1c3   : > { %v405_v27 = vpop.xlane.xlu1 %404 }
 0x1c4   : > { %v1064_v28 = vpop.eup %1063  ;;  %1065 = vlog2.f32 %v405_v27 }
 0x1c5   : > { %v805_v29 = vmul.f32 %v1064_v28, %v803_v26  ;;  %v418_v35 = vpop.xlane.xlu0 %417 }
 0x1c7   : > { %v806_v31 = vmul.f32 %v1064_v28, %v805_v29 }
 0x1c9   : > { %v807_v32 = vmul.f32 0.5, %v806_v31 }
 0x1ca   : > { %v1066_v19 = vpop.eup %1065 }
 0x1cb   : > { %v407_v33 = vmul.f32 0.6931472, %v1066_v19  ;;  %v808_v34 = vsub.f32 1.5, %v807_v32 }
 0x1cd   : > { %v809_v36 = vmul.f32 %v1064_v28, %v808_v34  ;;  %v408_v37 = vadd.f32 %v407_v33, %v399_v4 }
 0x1cf   : > { %v810_v39 = vmul.f32 %v809_v36, %v803_v26  ;;  %v419_v40 = vsub.f32 %v408_v37, %v418_v35 }
 0x1d1   : > { %v812_v42 = vsel %vm811_vm14, %v803_v26, %v810_v39  ;;  %v420_v44 = vsel %vm395_vm13, %v419_v40, 0.0 }
 0x1d2   : > { %v815_v45 = vsel %vm813_vm0, %v814_v41, %v812_v42  ;;  %v422_v46 = vadd.f32 %v421_v38, %v420_v44  ;;  %823 = sbr.rel (%p1012_p9) target bundleno = 492 (0x1ec), region = 40 }
 0x1d3   : > { %v817_v47 = vsel %vm395_vm13, %v815_v45, 0.0 }
 0x1d4   : > { %v818_v18 = vadd.f32 %v817_v47, %v816_v43  ;;  %424 = vst.msk [vmem:[#allocation2] sm:$0xff] %vm423_vm15, %v422_v46 }
 0x1d6   : > { %819 = vst.msk [vmem:[#allocation3] sm:$0xff] %vm423_vm15, %v818_v18 }
 0x1d7   : > { %vm832_vm1 = vcmask 0  }
 0x1db   : > { %v824_v48 = vld [vmem:[#allocation2] sm:$0xff] }
 0x1dc   : > { %v825_v50 = vsel %vm423_vm15, %v824_v48, 0.0 }
 0x1dd   : > { %v834_v49 = vld [vmem:[#allocation3] sm:$0xff]  ;;  %v826_v52 = vrot.slane %v825_v50, 4 }
 0x1de   : > { %v835_v51 = vsel %vm423_vm15, %v834_v49, 0.0 }
 0x1df   : > { %v836_v53 = vrot.slane %v835_v51, 4  ;;  %v827_v54 = vadd.f32 %v826_v52, %v825_v50 }
 0x1e1   : > { %v837_v55 = vadd.f32 %v836_v53, %v835_v51  ;;  %v828_v56 = vrot.slane %v827_v54, 2 }
 0x1e3   : > { %v838_v57 = vrot.slane %v837_v55, 2  ;;  %v829_v58 = vadd.f32 %v828_v56, %v827_v54 }
 0x1e5   : > { %v839_v59 = vadd.f32 %v838_v57, %v837_v55  ;;  %v830_v60 = vrot.slane %v829_v58, 1 }
 0x1e7   : > { %v840_v61 = vrot.slane %v839_v59, 1  ;;  %v831_v62 = vadd.f32 %v830_v60, %v829_v58 }
 0x1e9   : > { %v841_v63 = vadd.f32 %v840_v61, %v839_v59  ;;  %833 = vst.msk [vmem:[%s359_s27] sm:$0x1] %vm832_vm1, %v831_v62 }
 0x1eb   : > { %842 = vst.msk [vmem:[%s362_s30] sm:$0x1] %vm832_vm1, %v841_v63 }
 0x1ec PF: > { %s15_s19 = sadd.s32 1, %s1105_s19   ;;  %s1348_s15 = smov %s1097_s17 }
 0x1ed   : > { %p12_p10 = scmp.ge.s32.totalorder %s15_s19, 6   ;;  %s1349_s16 = smov %s1101_s18 }
 0x1ee   : > { %s1350_s17 = smov %s1353_s20  ;;  %s1351_s18 = smov %s1357_s21 }
 0x1ef   :  { %14 = sbr.rel (!%p12_p10) target bundleno = 3 (0x3), region = 88 }

</bundles_post_ra>
